<compile_context>
chip_gen: v7x
topology: tpu7x:2x2x1
jax: 0.10.0
libtpu: 0.0.40
codegen_flags: <defaults>
</compile_context>

<pallas_src>
import jax
import jax.numpy as jnp
from jax.experimental import pallas as pl
from jax.experimental.pallas import tpu as pltpu


# ----------------------------------------------------------------------------
# Small helpers
# ----------------------------------------------------------------------------
def _cdiv(a: int, b: int) -> int:
    return -(-a // b)


def _round_up(x: int, m: int) -> int:
    return ((x + m - 1) // m) * m


def _pad2d(a, rows, cols):
    r, c = a.shape
    if r == rows and c == cols:
        return a
    return jnp.pad(a, ((0, rows - r), (0, cols - c)))


def _as_2d(a):
    # mirrors torch _flat_sum's flatten(1)
    return a if a.ndim == 2 else a.reshape(a.shape[0], -1)


def _vmem_budget_bytes() -> int:
    """Per-generation VMEM budget: ~half of physical VMEM (64 MiB on
    v5e/v6e's 128 MiB, 32 MiB on v7x's 64 MiB)."""
    try:
        cap = int(pltpu.get_tpu_info().vmem_capacity_bytes)
    except Exception:
        cap = 64 * 1024 * 1024  # conservative (v7x-sized) fallback
    return min(max(32 * 1024 * 1024, cap // 2), cap * 3 // 4)


def _pick_tile(dim_pad: int, target: int) -> int:
    """Largest multiple of 128 that divides `dim_pad` (a multiple of 128)
    and is <= target."""
    units = dim_pad // 128
    best, t = 1, 1
    while t <= units and t * 128 <= target:
        if units % t == 0:
            best = t
        t += 1
    return best * 128


# ----------------------------------------------------------------------------
# Kernel 1: contained module forward (linear layer)
# ----------------------------------------------------------------------------
def _linear_kernel_single_k(x_ref, w_ref, b_ref, o_ref):
    # Whole contracting dim in one block: no accumulator, no pl.when.
    acc = jnp.dot(x_ref[...].astype(jnp.bfloat16), w_ref[...],
                  preferred_element_type=jnp.float32)
    o_ref[...] = (acc + b_ref[...]).astype(o_ref.dtype)


def _linear_kernel_acc(x_ref, w_ref, b_ref, o_ref, acc_ref):
    @pl.when(pl.program_id(2) == 0)
    def _init():
        acc_ref[...] = jnp.zeros_like(acc_ref)

    acc_ref[...] += jnp.dot(x_ref[...].astype(jnp.bfloat16), w_ref[...],
                            preferred_element_type=jnp.float32)

    @pl.when(pl.program_id(2) == pl.num_programs(2) - 1)
    def _finalize():
        o_ref[...] = (acc_ref[...] + b_ref[...]).astype(o_ref.dtype)


def _linear_forward(x, w_p, b_p, d_in, d_out, *, out_dtype=jnp.float32):
    """x: (N, d_in) any float dtype.  w_p: (K_pad, Ncols_pad) bf16, zero-padded.
    b_p: (1, Ncols_pad) f32, zero-padded.  Returns (N, d_out) in out_dtype."""
    x = _as_2d(x)
    N, xin = x.shape
    assert xin == d_in, f"expected {d_in} input features, got {xin}"
    k_pad, n_cols_pad = w_p.shape

    # Pad only the contracting axis (garbage K columns would pollute the MXU
    # result; M/N partial blocks only produce rows/cols we never store).
    if d_in != k_pad:
        x = jnp.pad(x, ((0, 0), (0, k_pad - d_in)))

    tm = min(512, _round_up(N, 16))
    tn = _pick_tile(n_cols_pad, 512)
    gm, gn = _cdiv(N, tm), n_cols_pad // tn
    # v7x has 2 TensorCores: make sure the parallel axes expose >= 2 points.
    if gm * gn == 1:
        if n_cols_pad // 128 >= 2:
            tn = _pick_tile(n_cols_pad, max(128, tn // 2))
        elif N > 16:
            tm = _round_up(_cdiv(N, 2), 16)
        gm, gn = _cdiv(N, tm), n_cols_pad // tn

    budget = _vmem_budget_bytes()
    out_shape = jax.ShapeDtypeStruct((N, d_out), out_dtype)

    if k_pad <= 2048:
        # Single K tile: drop scratch + init/finalize, add bias in one step.
        return pl.pallas_call(
            _linear_kernel_single_k,
            out_shape=out_shape,
            grid_spec=pltpu.PrefetchScalarGridSpec(
                num_scalar_prefetch=0,
                grid=(gm, gn),
                in_specs=[
                    pl.BlockSpec((tm, k_pad), lambda i, j: (i, 0)),
                    pl.BlockSpec((k_pad, tn), lambda i, j: (0, j)),
                    pl.BlockSpec((1, tn), lambda i, j: (0, j)),
                ],
                out_specs=pl.BlockSpec((tm, tn), lambda i, j: (i, j)),
            ),
            compiler_params=pltpu.CompilerParams(
                dimension_semantics=("parallel", "parallel"),
                vmem_limit_bytes=budget),
        )(x, w_p, b_p)

    tk = _pick_tile(k_pad, 512)
    return pl.pallas_call(
        _linear_kernel_acc,
        out_shape=out_shape,
        grid_spec=pltpu.PrefetchScalarGridSpec(
            num_scalar_prefetch=0,
            grid=(gm, gn, k_pad // tk),
            in_specs=[
                pl.BlockSpec((tm, tk), lambda i, j, k: (i, k)),
                pl.BlockSpec((tk, tn), lambda i, j, k: (k, j)),
                pl.BlockSpec((1, tn), lambda i, j, k: (0, j)),
            ],
            out_specs=pl.BlockSpec((tm, tn), lambda i, j, k: (i, j)),
            scratch_shapes=[pltpu.VMEM((tm, tn), jnp.float32)],
        ),
        compiler_params=pltpu.CompilerParams(
            dimension_semantics=("parallel", "parallel", "arbitrary"),
            vmem_limit_bytes=budget),
    )(x, w_p, b_p)


# ----------------------------------------------------------------------------
# Kernel 2: local gradient-based loss (update_local's local_loss_fn)
#   loss_i = damping * sum_j d_ij^2 + [sign of] sum_j d_ij g_ij,  d = out - x0
# ----------------------------------------------------------------------------
def _make_grad_loss_kernel(damping: float, sign_only: bool, D: int, tile_d: int):
    need_mask = (D % tile_d) != 0  # ragged trailing D block -> zero the tail

    def kernel(out_ref, x0_ref, g_ref, loss_ref, dots_acc, ss_acc):
        d_idx = pl.program_id(1)

        @pl.when(d_idx == 0)
        def _init():
            dots_acc[...] = jnp.zeros_like(dots_acc)
            ss_acc[...] = jnp.zeros_like(ss_acc)

        # Cast in VMEM: inputs arrive in their native dtype (bf16 or f32).
        diff = out_ref[...].astype(jnp.float32) - x0_ref[...].astype(jnp.float32)
        g = g_ref[...].astype(jnp.float32)
        width = diff.shape[1]

        if need_mask:
            col = (jax.lax.broadcasted_iota(jnp.int32, (1, width), 1)
                   + d_idx * tile_d)
            mask = col < D
        else:
            mask = None

        ones_col = jnp.ones((width, 1), jnp.float32)

        def col_reduce(t):
            # (tile_n, tile_d) -> (tile_n, 1) on the MXU in its natural
            # (M,K)x(K,1) orientation: no XLU transpose of the big tile.
            if mask is not None:
                t = jnp.where(mask, t, 0.0)
            return jnp.dot(t, ones_col, preferred_element_type=jnp.float32)

        if sign_only:
            dots_acc[...] += col_reduce(diff * g)
            if damping != 0.0:
                ss_acc[...] += col_reduce(diff * diff)
        else:
            # Fused: damping*sum(d^2) + sum(d*g) == sum(d*(damping*d + g))
            t = diff * (damping * diff + g) if damping != 0.0 else diff * g
            dots_acc[...] += col_reduce(t)

        @pl.when(d_idx == pl.num_programs(1) - 1)
        def _finalize():
            if sign_only:
                res = jnp.sign(dots_acc[...])
                if damping != 0.0:
                    res = res + damping * ss_acc[...]
            else:
                res = dots_acc[...]
            loss_ref[...] = res.astype(loss_ref.dtype)

    return kernel


def gradient_local_loss(outputs, original_out, grads, *, damping=0.0,
                        sign_only=False, block_budget_bytes=None):
    """Per-example local linear loss.  Inputs are used in their native dtype
    (no wrapper-side upcasts / pads); `damping`/`sign_only` are static."""
    damping = float(damping)
    o = _as_2d(outputs)
    x0 = _as_2d(original_out)
    g = _as_2d(grads)
    N, D = o.shape
    assert x0.shape == (N, D) and g.shape == (N, D)

    vmem_budget = _vmem_budget_bytes()
    usable = int((block_budget_bytes if block_budget_bytes is not None
                  else vmem_budget) * 0.6)
    bytes_per_row_elem = (jnp.dtype(o.dtype).itemsize
                          + jnp.dtype(x0.dtype).itemsize
                          + jnp.dtype(g.dtype).itemsize)

    # Row tile: big and sublane-aligned; feature tile: whole D if it fits the
    # per-generation budget (3 inputs x 2 buffers), else a 128-multiple slice.
    tile_n = min(512, _round_up(N, 16))
    if 2 * tile_n * D * bytes_per_row_elem <= usable:
        tile_d = D
    else:
        tile_d = max(128, (usable // (2 * tile_n * bytes_per_row_elem))
                     // 128 * 128)
        while 2 * tile_n * tile_d * bytes_per_row_elem > usable and tile_n > 128:
            tile_n = max(128, tile_n // 2)
            tile_d = max(128, (usable // (2 * tile_n * bytes_per_row_elem))
                         // 128 * 128)
        tile_d = min(tile_d, _round_up(D, 128))

    grid_n = _cdiv(N, tile_n)
    grid_d = _cdiv(D, tile_d)

    out = pl.pallas_call(
        _make_grad_loss_kernel(damping, sign_only, D, tile_d),
        out_shape=jax.ShapeDtypeStruct((N, 1), jnp.float32),
        grid_spec=pltpu.PrefetchScalarGridSpec(
            num_scalar_prefetch=0,
            grid=(grid_n, grid_d),
            in_specs=[
                pl.BlockSpec((tile_n, tile_d), lambda i, d: (i, d)),
                pl.BlockSpec((tile_n, tile_d), lambda i, d: (i, d)),
                pl.BlockSpec((tile_n, tile_d), lambda i, d: (i, d)),
            ],
            out_specs=pl.BlockSpec((tile_n, 1), lambda i, d: (i, 0)),
            scratch_shapes=[pltpu.VMEM((tile_n, 1), jnp.float32),
                            pltpu.VMEM((tile_n, 1), jnp.float32)],
        ),
        compiler_params=pltpu.CompilerParams(
            dimension_semantics=("parallel", "arbitrary"),
            vmem_limit_bytes=vmem_budget),
    )(o, x0, g)
    return out[:, 0]  # 1-D per-example losses, like the torch version


# ----------------------------------------------------------------------------
# Thin module wrapper mirroring CascadeGradientLoss semantics
# ----------------------------------------------------------------------------
class CascadeGradientLossJAX:
    """Wraps a contained linear CascadeModule.  forward() is the contained
    forward (the ctx path only caches / marks for grad); update_local's local
    linear loss is exposed as `local_loss`.  Padded bf16 weights / f32 bias
    are cached once at construction time."""

    def __init__(self, w, b, damping: float = 0.0, sign_only: bool = False,
                 out_dtype=jnp.float32):
        w = jnp.asarray(w)
        assert w.ndim == 2
        b = jnp.asarray(b).reshape(1, -1).astype(jnp.float32)
        self.d_in, self.d_out = int(w.shape[0]), int(w.shape[1])
        k_pad = _round_up(self.d_in, 128)
        n_pad = _round_up(self.d_out, 128)
        # Static across calls: pad + cast once, not per forward.
        self.w_p = _pad2d(w, k_pad, n_pad).astype(jnp.bfloat16)
        self.b_p = _pad2d(b, 1, n_pad)
        self.damping = float(damping)
        self.sign_only = bool(sign_only)
        self.out_dtype = out_dtype

    def forward(self, x):
        return _linear_forward(x, self.w_p, self.b_p, self.d_in, self.d_out,
                               out_dtype=self.out_dtype)

    __call__ = forward

    def local_loss(self, outputs, original_out, grads):
        return gradient_local_loss(outputs, original_out, grads,
                                   damping=self.damping,
                                   sign_only=self.sign_only)


# ----------------------------------------------------------------------------
# Self-test
# ----------------------------------------------------------------------------
if __name__ == "__main__":
    key = jax.random.PRNGKey(0)
    k_x, k_w, k_b, k_g, k_p = jax.random.split(key, 5)

    # Deliberately non-tile-aligned shapes to exercise partial-block / padding
    # paths (M handled by cdiv, K padded to 128, N_out 160 -> 256 columns).
    N, D_in, D_out = 48, 96, 160
    x = jax.random.normal(k_x, (N, D_in), jnp.float32)
    w = jax.random.normal(k_w, (D_in, D_out), jnp.float32) * 0.1
    b = jax.random.normal(k_b, (1, D_out), jnp.float32) * 0.1

    module = CascadeGradientLossJAX(w, b, damping=0.5, sign_only=False)

    # Forward pass (CascadeGradientLoss forward == contained forward).
    out = jax.block_until_ready(module.forward(x))
    assert out.shape == (N, D_out) and out.dtype == jnp.float32

    # Reference forward: same bf16-operand / f32-accumulate matmul as kernel.
    ref_out = jnp.dot(x.astype(jnp.bfloat16), w.astype(jnp.bfloat16),
                      preferred_element_type=jnp.float32) + b
    assert jnp.allclose(out, ref_out, atol=1e-3, rtol=1e-3), "forward mismatch"

    # Emulate update_local(): original outputs, synthetic upstream gradient,
    # candidate outputs perturbed from the originals.
    grads = jax.random.normal(k_g, (N, D_out), jnp.float32)
    candidate = out + 0.05 * jax.random.normal(k_p, (N, D_out), jnp.float32)

    losses = jax.block_until_ready(module.local_loss(candidate, out, grads))
    d = candidate - out
    ref_losses = 0.5 * jnp.sum(d * d, axis=1) + jnp.sum(d * grads, axis=1)
    assert losses.shape == (N,)
    assert jnp.allclose(losses, ref_losses, atol=1e-3, rtol=1e-3), "loss mismatch"

    # Force the feature-axis (D) tiling path: tiny block budget -> tile_d=128,
    # two D steps with the ragged trailing block masked (160 % 128 != 0).
    losses_tiled = jax.block_until_ready(
        gradient_local_loss(candidate, out, grads, damping=0.5,
                            sign_only=False, block_budget_bytes=256 * 1024))
    assert jnp.allclose(losses_tiled, ref_losses, atol=1e-3, rtol=1e-3), \
        "D-tiled loss mismatch"

    # Native-bf16 inputs: no wrapper-side upcast, the kernel casts in VMEM.
    cb, ob, gb = (candidate.astype(jnp.bfloat16), out.astype(jnp.bfloat16),
                  grads.astype(jnp.bfloat16))
    losses_bf16 = jax.block_until_ready(
        gradient_local_loss(cb, ob, gb, damping=0.5, sign_only=False))
    db = cb.astype(jnp.float32) - ob.astype(jnp.float32)
    ref_bf16 = 0.5 * jnp.sum(db * db, 1) + jnp.sum(db * gb.astype(jnp.float32), 1)
    assert jnp.allclose(losses_bf16, ref_bf16, atol=1e-3, rtol=1e-3), \
        "bf16 loss mismatch"

    # sign_only path (sign applies to the dot term only, as in the torch code;
    # allow mismatch only where the dot is ~0).
    module_sign = CascadeGradientLossJAX(w, b, damping=0.0, sign_only=True)
    sign_losses = jax.block_until_ready(
        module_sign.local_loss(candidate, out, grads))
    ref_dots = jnp.sum(d * grads, axis=1)
    ok = (sign_losses == jnp.sign(ref_dots)) | (jnp.abs(ref_dots) < 1e-3)
    assert bool(jnp.all(ok)), "sign_only loss mismatch"

    print("KERNEL_OK")
</pallas_src>

<mosaic_0001>
module attributes {stable_mosaic.version = 11 : i64} {
  func.func @_linear_kernel_single_k(%arg0: i32, %arg1: i32, %arg2: memref<48x128xf32, #tpu.memory_space<vmem>>, %arg3: memref<128x128xbf16, #tpu.memory_space<vmem>>, %arg4: memref<1x128xf32, #tpu.memory_space<vmem>>, %arg5: memref<48x128xf32, #tpu.memory_space<vmem>>) attributes {dimension_semantics = [#tpu.dimension_semantics<parallel>, #tpu.dimension_semantics<parallel>], iteration_bounds = array<i64: 1, 2>, scalar_prefetch = 0 : i64, scratch_operands = 0 : i64, tpu.core_type = #tpu.core_type<tc>, window_params = [{transform_indices = @transform_0, window_bounds = array<i64: 48, 128>}, {transform_indices = @transform_1, window_bounds = array<i64: 128, 128>}, {transform_indices = @transform_2, window_bounds = array<i64: 1, 128>}, {transform_indices = @transform_3, window_bounds = array<i64: 48, 128>}]} {
    %c0 = arith.constant 0 : index
    %c0_0 = arith.constant 0 : index
    %0 = vector.load %arg2[%c0, %c0_0] : memref<48x128xf32, #tpu.memory_space<vmem>>, vector<48x128xf32>
    %1 = arith.truncf %0 : vector<48x128xf32> to vector<48x128xbf16>
    %c0_1 = arith.constant 0 : index
    %c0_2 = arith.constant 0 : index
    %2 = vector.load %arg3[%c0_1, %c0_2] : memref<128x128xbf16, #tpu.memory_space<vmem>>, vector<128x128xbf16>
    %cst = arith.constant dense<0.000000e+00> : vector<48x128xf32>
    %3 = tpu.matmul %1, %2, %cst {dimension_numbers = #tpu.dot_dimension_numbers<[1], [0], [0], [1], [0, 0, 1, 1], [], []>} : vector<48x128xbf16>, vector<128x128xbf16>, vector<48x128xf32> -> vector<48x128xf32>
    %c0_3 = arith.constant 0 : index
    %c0_4 = arith.constant 0 : index
    %4 = vector.load %arg4[%c0_3, %c0_4] : memref<1x128xf32, #tpu.memory_space<vmem>>, vector<1x128xf32>
    %5 = vector.broadcast %4 : vector<1x128xf32> to vector<48x128xf32>
    %6 = arith.addf %3, %5 : vector<48x128xf32>
    %c0_5 = arith.constant 0 : index
    %c0_6 = arith.constant 0 : index
    %7 = vector.load %arg5[%c0_5, %c0_6] : memref<48x128xf32, #tpu.memory_space<vmem>>, vector<48x128xf32>
    tpu.vector_store %arg5[%c0_5, %c0_6], %6 {strides = array<i32>} : memref<48x128xf32, #tpu.memory_space<vmem>>, vector<48x128xf32>,
    return
  }
  func.func @transform_0(%arg0: i32, %arg1: i32) -> (i32, i32) {
    %c0_i32 = arith.constant 0 : i32
    %c0_i32_0 = arith.constant 0 : i32
    return %arg0, %c0_i32 : i32, i32
  }
  func.func @transform_1(%arg0: i32, %arg1: i32) -> (i32, i32) {
    %c0_i32 = arith.constant 0 : i32
    %c0_i32_0 = arith.constant 0 : i32
    return %c0_i32, %arg1 : i32, i32
  }
  func.func @transform_2(%arg0: i32, %arg1: i32) -> (i32, i32) {
    %c0_i32 = arith.constant 0 : i32
    %c0_i32_0 = arith.constant 0 : i32
    return %c0_i32, %arg1 : i32, i32
  }
  func.func @transform_3(%arg0: i32, %arg1: i32) -> (i32, i32) {
    %c0_i32 = arith.constant 0 : i32
    return %arg0, %arg1 : i32, i32
  }
}

</mosaic_0001>

<bundles_post_ra>
// kernel: tpu_custom_call.1
= control target key start
LH: loop header
LB: loop body
LE: loop exit
PB: predicated region body
PF: predicated region fallthrough
CT: control target
= control target key end

     0   :  { %8 = vsyncpa [#allocation3], 0  ;;  %s1095_s0 = inlined_call_operand.hbm [shape: f32[48,128], index: 0, kind: input, shape index: {}]   ;;  %s1096_s1 = inlined_call_operand.hbm [shape: bf16[128,256], index: 1, kind: input, shape index: {}]   ;;  %s1097_s2 = inlined_call_operand.vmem [shape: f32[1,256], index: 2, kind: input, shape index: {}]   ;;  %s1098_s3 = inlined_call_operand.hbm [shape: f32[48,160], index: 3, kind: output, shape index: {}]  }
   0x1   :  { %9 = vsyncpa [#allocation6], 0 }
   0x2   :  { %11 = vsyncpa [#allocation6 + $0x1], 0 }
   0x3   :  { %12 = vsyncpa [#allocation4], 0 }
   0x4   :  { %14 = vsyncpa [#allocation4 + $0x1], 0  ;;  %s853_s12 = smov 0   ;;  %s855_s13 = smov 0  }
   0x5   :  { %s857_s14 = smov 0   ;;  %s859_s15 = smov 0  }
   0x6   :  { %s861_s16 = smov 0   ;;  %s863_s17 = smov 0  }
   0x7 LB: > { %s507_s18 = sadd.s32 4294967295, %s819_s17   ;;  %s508_s19 = sadd.s32 4294967294, %s819_s17   ;;  %s819_s17 = sphi %s863_s17, %s20_s17   ;;  %s815_s16 = sphi %s861_s16, %s1124_s16   ;;  %s811_s15 = sphi %s859_s15, %s1123_s15   ;;  %s807_s14 = sphi %s857_s14, %s1122_s14   ;;  %s803_s13 = sphi %s855_s13, %s1121_s13   ;;  %s799_s12 = sphi %s853_s12, %s1120_s12  }
   0x8   : > { %p72_p0 = scmp.ne.s32.totalorder %s807_s14, %s803_s13  ;;  %p73_p1 = scmp.eq.s32.totalorder %s819_s17, 0 }
   0x9   : > { %p78_p2 = scmp.ne.s32.totalorder %s803_s13, %s799_s12  ;;  %p890_p3 = scmp.eq.s32.totalorder %s507_s18, 0 }
   0xa   : > { %p894_p4 = por %p73_p1, %p72_p0  ;;  %p130_p5 = scmp.eq.s32.totalorder %s507_s18, 1 }
   0xb   : > { %s1105_s20 = scalar_select %p890_p3, 1, 0 }
   0xc   : > { %p900_p6 = por %p890_p3, %p78_p2  ;;  %p136_p7 = scmp.eq.s32.totalorder %s508_s19, 1 }
   0xd   : > { %p904_p8 = por %p130_p5, %p72_p0  ;;  %p509_p9 = scmp.ge.s32.totalorder %s819_s17, 1 }
   0xe   : > { %s1107_s22 = scalar_select %p900_p6, 1, 0 }
   0xf   : > { %s1108_s23 = scalar_select %p904_p8, 1, 0 }
  0x10   : > { %p909_p10 = por %p136_p7, %p78_p2  ;;  %p143_p11 = scmp.lt.s32.totalorder %s819_s17, 3 }
  0x11   : > { %s821_s26 = smov [#allocation2]   ;;  %p606_p1 = scmp.lt.s32.totalorder %s819_s17, 2 }
  0x12   : > { %s1109_s24 = scalar_select %p909_p10, 1, 0 }
  0x13   : > { %p914_p12 = pnand %p509_p9, %p143_p11  ;;  %s158_s27 = sshll.u32 %s821_s26, 4  ;;  %s918_s27 = int_to_ptr.vmem [resolvable:$true] %s158_s27 }
  0x14   : > { %p932_p2 = pnand %p606_p1, %p894_p4  ;;  %s29_s30 = sadd.s32 1, %s815_s16 }
  0x15   : > { %s1110_s25 = scalar_select %p914_p12, 1, 0 }
  0x16   : > { %p593_p13 = pneg %p914_p12  ;;  %s675_s6 = scalar_lea.hbm %s1095_s0, 768 }
  0x17   : > { %s1112_s29 = scalar_select %p932_p2, 1, 0 }
  0x18   : > { %p926_p5 = pnand %p593_p13, %p890_p3  ;;  %p676_p7 = scmp.ne.s32.totalorder %s1095_s0, %s675_s6 }
  0x19   : > { %p682_p4 = scmp.lt.u32.totalorder %s675_s6, %s1095_s0 }
  0x1a   : > { %p677_p9 = pneg %p926_p5 }
  0x1c   : > { %p678_p11 = pnand %p677_p9, %p676_p7 }
  0x1e   : > { %p679_p13 = pneg %p678_p11 }
  0x20   : > { %p684_p1 = pnand %p682_p4, %p679_p13 }
  0x22   : > { %687 = shalt.err (!%p684_p1)
}
  0x23   : > { %s688_s11 = scalar_lea.vmem %s918_s27, 768  ;;  %p696_p6 = scmp.lt.s32.totalorder %s918_s27, %s918_s27 }
  0x24   : > { %p689_p0 = scmp.ne.s32.totalorder %s918_s27, %s688_s11  ;;  %p697_p3 = scmp.lt.s32.totalorder %s688_s11, %s688_s11 }
  0x26   : > { %p691_p10 = pnand %p689_p0, %p677_p9  ;;  %p698_p12 = por %p697_p3, %p696_p6 }
  0x28   : > { %p692_p8 = pneg %p691_p10 }
  0x2a   : > { %p699_p2 = pnand %p698_p12, %p692_p8 }
  0x2c   : > { %702 = shalt.err (!%p699_p2)
}
  0x2d   : > { %s822_s18 = smov 128   ;;  %s823_s19 = smov 8  }
  0x2e   : > { %596 = dma.hbm_to_vmem [thread:$0]  (!%p926_p5), %s1095_s0, 768, %s918_s27, [#allocation3], %s822_s18, %s822_s18, %s823_s19  }
  0x2f   : > { %p30_p10 = scmp.ge.s32.totalorder %s29_s30, 2  ;;  %s65_s4 = sadd.s32 1, %s807_s14 }
  0x30   : > { %s172_s5 = sand.u32 1, %s807_s14   ;;  %s513_s8 = sshll.u32 %s815_s16, 6 }
  0x31   : > { %s1126_s30 = smov (%p30_p10, %s29_s30), 0  ;;  %s512_s6 = sshll.u32 %s172_s5, 6 }
  0x32   : > { %s62_s7 = ssub.s32 %s815_s16, %s1126_s30  ;;  %s970_s10 = scalar_lea.hbm %s1096_s1, %s513_s8 }
  0x33   : > { %p63_p3 = scmp.eq.s32.totalorder %s62_s7, 0  ;;  %s176_s27 = scalar_lea.vmem [#allocation5], %s512_s6 }
  0x34   : > { %s182_s11 = sshll.u32 %s176_s27, 4  ;;  %s977_s21 = scalar_lea.sflag [#allocation6], %s172_s5  ;;  %s975_s11 = int_to_ptr.vmem [resolvable:$true] %s182_s11 }
  0x35   : > { %s973_s19 = scalar_select %p63_p3, %s807_s14, %s65_s4  }
  0x36   : > { %s703_s26 = scalar_lea.hbm %s970_s10, 1024  ;;  %p1113_p8 = scmp.ne.s32.totalorder %s1112_s29, 0 }
  0x37   : > { %p704_p6 = scmp.ne.s32.totalorder %s970_s10, %s703_s26  ;;  %s708_s9 = scalar_lea.hbm %s1096_s1, 2048 }
  0x38   : > { %p705_p12 = pneg %p1113_p8  ;;  %p709_p2 = scmp.lt.u32.totalorder %s970_s10, %s1096_s1 }
  0x39   : > { %p710_p7 = scmp.lt.u32.totalorder %s708_s9, %s703_s26  ;;  %p712_p11 = scmp.lt.u32.totalorder %s703_s26, %s970_s10 }
  0x3a   : > { %p706_p0 = pnand %p705_p12, %p704_p6 }
  0x3b   : > { %p711_p9 = por %p710_p7, %p709_p2 }
  0x3c   : > { %p707_p5 = pneg %p706_p0 }
  0x3d   : > { %p713_p13 = por %p712_p11, %p711_p9 }
  0x3f   : > { %p714_p4 = pnand %p713_p13, %p707_p5 }
  0x41   : > { %717 = shalt.err (!%p714_p4)
}
  0x42   : > { %s718_s4 = scalar_lea.vmem %s975_s11, 1024  ;;  %s824_s5 = smov [#allocation5]  }
  0x43   : > { %p719_p1 = scmp.ne.s32.totalorder %s975_s11, %s718_s4  ;;  %s723_s27 = sshll.u32 %s824_s5, 4  ;;  %s724_s27 = int_to_ptr.vmem [resolvable:$false] %s723_s27 }
  0x44   : > { %s725_s7 = scalar_lea.vmem %s724_s27, 2048  ;;  %p726_p6 = scmp.lt.s32.totalorder %s975_s11, %s724_s27 }
  0x45   : > { %p721_p10 = pnand %p719_p1, %p705_p12  ;;  %p727_p0 = scmp.lt.s32.totalorder %s725_s7, %s718_s4 }
  0x47   : > { %p722_p3 = pneg %p721_p10  ;;  %p728_p2 = por %p727_p0, %p726_p6 }
  0x49   : > { %p729_p7 = pnand %p728_p2, %p722_p3 }
  0x4b   : > { %732 = shalt.err (!%p729_p7)
}
  0x4c   : > { %s825_s26 = smov 64   ;;  %s826_s8 = smov 4  }
  0x4d   : > { %600 = dma.hbm_to_vmem [thread:$0]  (!%p1113_p8), %s970_s10, 1024, %s975_s11, %s977_s21, %s822_s18, %s825_s26, %s826_s8  }
  0x4e   : > { %p1114_p12 = scmp.ne.s32.totalorder %s1110_s25, 0 }
  0x4f   : > { %p1115_p5 = scmp.ne.s32.totalorder (!%p1114_p12), %s1105_s20, 0 }
  0x50   : > { %200 = sbr.rel (%p1114_p12) target bundleno = 366 (0x16e), region = 32 }
  0x57   : > { %786 = dma.done.wait (%p1115_p5), [#allocation3], 768  }
  0x58   : > { %788 = vsyncadd (%p1115_p5), [#allocation3], 4294966528  ;;  %s1013_s9 = sand.u32 1, %s803_s13   ;;  %p1116_p8 = scmp.ne.s32.totalorder %s1107_s22, 0 }
  0x59   : > { %s516_s6 = sshll.u32 %s1013_s9, 6  ;;  %s207_s28 = scalar_lea.sflag [#allocation6], %s1013_s9 }
  0x5a   : > { %s1017_s29 = scalar_lea.vmem [#allocation5], %s516_s6 }
  0x5b   : > { %790 = dma.done.wait (%p1116_p8), %s207_s28, 1024  }
  0x5c   : > { %792 = vsyncadd (%p1116_p8), %s207_s28, 4294966272  ;;  %v827_v0 = vmov 0.0   ;;  %vm828_vm0 = vmmov 0   ;;  %v667_v1 = vld [vmem:[%s1017_s29] sm:$0xff]   ;;  %v668_v2 = vld [vmem:[%s1017_s29 + $0x8] sm:$0xff]   ;;  %p237_p9 = scmp.lt.s32.totalorder %s811_s15, 1 }
  0x5d   : > { %568 = vmatprep.subr.bf16.mxu1 %v827_v0  ;;  %540 = vmatprep.subr.bf16.mxu0 %v827_v0  ;;  %v669_v3 = vld [vmem:[%s1017_s29 + $0x10] sm:$0xff]   ;;  %v670_v4 = vld [vmem:[%s1017_s29 + $0x18] sm:$0xff]   ;;  %v671_v5 = vld [vmem:[%s1017_s29 + $0x20] sm:$0xff]   ;;  %s584_s10 = smul.u32 48, %s1013_s9  ;;  %s526_s4 = sshll.u32 %s811_s15, 7 }
  0x5e   : > { %560 = vmatprep.mubr.msk.bf16.mxu1 %vm828_vm0, %v827_v0  ;;  %556 = vmatprep.mubr.msk.bf16.mxu0 %vm828_vm0, %v827_v0  ;;  %v672_v6 = vld [vmem:[%s1017_s29 + $0x28] sm:$0xff]   ;;  %v673_v7 = vld [vmem:[%s1017_s29 + $0x30] sm:$0xff]   ;;  %v674_v8 = vld [vmem:[%s1017_s29 + $0x38] sm:$0xff]   ;;  %s238_s20 = scalar_select %p237_p9, %s811_s15, 1 }
  0x5f   : > { %576 = vmatpush3.bf16.msra.mxu1 %v667_v1  ;;  %541 = vmatpush3.bf16.msra.mxu0 %v667_v1  ;;  %v244_v9 = vld [vmem:[#allocation2 + $0x10] sm:$0xff]  ;;  %v245_v10 = vld [vmem:[#allocation2 + $0x18] sm:$0xff]  ;;  %v242_v11 = vld [vmem:[#allocation2] sm:$0xff]  ;;  %s235_s11 = scalar_lea.vmem [#allocation7], %s584_s10  ;;  %s1046_s7 = scalar_lea.hbm %s1098_s3, %s526_s4 }
  0x60   : > { %569 = vmatprep.subr.bf16.mxu1 %v827_v0  ;;  %542 = vmatprep.subr.bf16.mxu0 %v827_v0  ;;  %v243_v12 = vld [vmem:[#allocation2 + $0x8] sm:$0xff]  ;;  %v249_v13 = vpack.c.bf16 %v245_v10, %v244_v9  ;;  %v246_v15 = vld [vmem:[#allocation2 + $0x20] sm:$0xff]  ;;  %s239_s18 = scalar_lea.vmem %s1097_s2, %s238_s20  ;;  %s401_s21 = sshll.u32 %s235_s11, 4  ;;  %s1041_s21 = int_to_ptr.vmem [resolvable:$true] %s401_s21 }
  0x61   : > { %v248_v14 = vpack.c.bf16 %v243_v12, %v242_v11  ;;  %v247_v16 = vld [vmem:[#allocation2 + $0x28] sm:$0xff]  ;;  %v517_v18 = vld [vmem:[%s239_s18] ss:$0 sm:$0xff]  ;;  %s386_s26 = scalar_lea.sflag [#allocation4], %s1013_s9  ;;  %s733_s15 = scalar_lea.vmem %s1041_s21, 768 }
  0x62   : > { %v250_v17 = vpack.c.bf16 %v247_v16, %v246_v15  ;;  %p734_p11 = scmp.ne.s32.totalorder %s1041_s21, %s733_s15  ;;  %p1117_p13 = scmp.ne.s32.totalorder %s1108_s23, 0 }
  0x63   : > { %577 = vmatpush3.bf16.msra.mxu1 %v668_v2  ;;  %543 = vmatpush3.bf16.msra.mxu0 %v668_v2  ;;  %s829_s8 = smov [#allocation7]  }
  0x64   : > { %570 = vmatprep.subr.bf16.mxu1 %v827_v0  ;;  %544 = vmatprep.subr.bf16.mxu0 %v827_v0  ;;  %p735_p4 = pnand %p734_p11, %p1117_p13  ;;  %s737_s6 = sshll.u32 %s829_s8, 4  ;;  %s738_s6 = int_to_ptr.vmem [resolvable:$false] %s737_s6 }
  0x65   : > { %s739_s28 = scalar_lea.vmem %s738_s6, 1536  ;;  %p740_p10 = scmp.lt.s32.totalorder %s1041_s21, %s738_s6 }
  0x66   : > { %p736_p1 = pneg %p735_p4  ;;  %p741_p3 = scmp.lt.s32.totalorder %s739_s28, %s733_s15 }
  0x67   : > { %578 = vmatpush3.bf16.msra.mxu1 %v669_v3  ;;  %545 = vmatpush3.bf16.msra.mxu0 %v669_v3 }
  0x68   : > { %571 = vmatprep.subr.bf16.mxu1 %v827_v0  ;;  %546 = vmatprep.subr.bf16.mxu0 %v827_v0  ;;  %p742_p6 = por %p741_p3, %p740_p10 }
  0x6a   : > { %p743_p0 = pnand %p742_p6, %p736_p1 }
  0x6b   : > { %579 = vmatpush3.bf16.msra.mxu1 %v670_v4  ;;  %547 = vmatpush3.bf16.msra.mxu0 %v670_v4 }
  0x6c   : > { %572 = vmatprep.subr.bf16.mxu1 %v827_v0  ;;  %548 = vmatprep.subr.bf16.mxu0 %v827_v0 }
  0x6f   : > { %580 = vmatpush3.bf16.msra.mxu1 %v671_v5  ;;  %549 = vmatpush3.bf16.msra.mxu0 %v671_v5 }
  0x70   : > { %573 = vmatprep.subr.bf16.mxu1 %v827_v0  ;;  %550 = vmatprep.subr.bf16.mxu0 %v827_v0 }
  0x73   : > { %581 = vmatpush3.bf16.msra.mxu1 %v672_v6  ;;  %551 = vmatpush3.bf16.msra.mxu0 %v672_v6 }
  0x74   : > { %574 = vmatprep.subr.bf16.mxu1 %v827_v0  ;;  %552 = vmatprep.subr.bf16.mxu0 %v827_v0 }
  0x77   : > { %582 = vmatpush3.bf16.msra.mxu1 %v673_v7  ;;  %553 = vmatpush3.bf16.msra.mxu0 %v673_v7 }
  0x78   : > { %575 = vmatprep.subr.bf16.mxu1 %v827_v0  ;;  %554 = vmatprep.subr.bf16.mxu0 %v827_v0 }
  0x7b   : > { %583 = vmatpush3.bf16.msra.mxu1 %v674_v8  ;;  %555 = vmatpush3.bf16.msra.mxu0 %v674_v8 }
  0x7e   : > { %561 = vmatmul.mubr.bf16.vlgmr.msra.gmra.mrb[0].mxu1 %v249_v13  ;;  %557 = vmatmul.mubr.bf16.vlgmr.msra.gmra.mrb[0].mxu0 %v248_v14 }
  0x7f   : > { %564 = vmatprep.mubr.msk.bf16.mxu1 %vm828_vm0, %v827_v0 }
  0x86   : > { %565 = vmatmul.mubr.bf16.gmra.mrb[4].mxu1 %v250_v17 }
 0x151   : > { %v364_v19 = vpop.f32.mrb[0].mxu1  ;;  %v356_v20 = vpop.f32.mrb[0].mxu0 }
 0x152   : > { %v365_v21 = vadd.f32 %v517_v18, %v364_v19  ;;  %v562_v22 = vpop.f32.mrb[1].mxu1  ;;  %v357_v23 = vadd.f32 %v517_v18, %v356_v20  ;;  %v558_v24 = vpop.f32.mrb[1].mxu0 }
 0x153   : > { %v367_v25 = vpop.f32.mrb[2].mxu1  ;;  %v359_v26 = vpop.f32.mrb[2].mxu0 }
 0x154   : > { %381 = vst [vmem:[%s235_s11 + $0x10] sm:$0xff] %v365_v21  ;;  %v368_v27 = vadd.f32 %v517_v18, %v367_v25  ;;  %v563_v28 = vpop.f32.mrb[3].mxu1  ;;  %379 = vst [vmem:[%s235_s11] sm:$0xff] %v357_v23  ;;  %v360_v29 = vadd.f32 %v517_v18, %v359_v26  ;;  %v559_v30 = vpop.f32.mrb[3].mxu0 }
 0x156   : > { %382 = vst [vmem:[%s235_s11 + $0x18] sm:$0xff] %v368_v27  ;;  %380 = vst [vmem:[%s235_s11 + $0x8] sm:$0xff] %v360_v29 }
 0x159   : > { %v372_v31 = vpop.f32.mrb[4].mxu1 }
 0x15a   : > { %v373_v32 = vadd.f32 %v517_v18, %v372_v31  ;;  %v566_v33 = vpop.f32.mrb[5].mxu1 }
 0x15b   : > { %v375_v34 = vpop.f32.mrb[6].mxu1 }
 0x15c   : > { %383 = vst [vmem:[%s235_s11 + $0x20] sm:$0xff] %v373_v32  ;;  %v376_v35 = vadd.f32 %v517_v18, %v375_v34  ;;  %v567_v36 = vpop.f32.mrb[7].mxu1 }
 0x15e   : > { %384 = vst [vmem:[%s235_s11 + $0x28] sm:$0xff] %v376_v35 }
 0x15f   : > { %746 = shalt.err (!%p743_p0)
}
 0x160   : > { %s747_s29 = scalar_lea.hbm %s1046_s7, 768  ;;  %s751_s25 = scalar_lea.hbm %s1098_s3, 1536 }
 0x161   : > { %p748_p2 = scmp.ne.s32.totalorder %s1046_s7, %s747_s29  ;;  %p752_p5 = scmp.lt.u32.totalorder %s1046_s7, %s1098_s3 }
 0x162   : > { %p753_p8 = scmp.lt.u32.totalorder %s751_s25, %s747_s29  ;;  %p755_p11 = scmp.lt.u32.totalorder %s747_s29, %s1046_s7 }
 0x163   : > { %p749_p7 = pnand %p748_p2, %p1117_p13 }
 0x164   : > { %p754_p9 = por %p753_p8, %p752_p5 }
 0x165   : > { %p750_p12 = pneg %p749_p7 }
 0x166   : > { %p756_p4 = por %p755_p11, %p754_p9 }
 0x168   : > { %p757_p1 = pnand %p756_p4, %p750_p12 }
 0x16a   : > { %760 = shalt.err (!%p757_p1)
}
 0x16b   : > { %s830_s11 = smov 128   ;;  %s831_s4 = smov 256  }
 0x16c   : > { %s832_s5 = smov 8  }
 0x16d   : > { %591 = dma.vmem_to_hbm [thread:$0]  (%p1117_p13), %s1041_s21, 768, %s1046_s7, %s386_s26, %s830_s11, %s831_s4, %s832_s5  }
 0x16e PF: > { %s416_s27 = sand.u32 1, %s799_s12   ;;  %p1118_p10 = scmp.ne.s32.totalorder %s1109_s24, 0 }
 0x16f   : > { %p1119_p3 = scmp.ge.s32.totalorder %s819_s17, 2  ;;  %s417_s15 = scalar_lea.sflag [#allocation4], %s416_s27 }
 0x171   : > { %p602_p6 = pnand %p1119_p3, %p1118_p10 }
 0x173   : > { %794 = dma.done.wait (!%p602_p6), %s417_s15, 768  }
 0x174   : > { %796 = vsyncadd (!%p602_p6), %s417_s15, 4294966528  ;;  %s20_s17 = sadd.s32 1, %s819_s17   ;;  %s1120_s12 = smov %s803_s13 }
 0x175   : > { %p17_p0 = scmp.ge.s32.totalorder %s20_s17, 4   ;;  %s1121_s13 = smov %s807_s14 }
 0x176   : > { %s1122_s14 = smov %s973_s19  ;;  %s1123_s15 = smov %s815_s16 }
 0x177   : > { %s1124_s16 = smov %s1126_s30  ;;  %19 = sbr.rel (!%p17_p0) target bundleno = 7 (0x7), region = 86 }
 0x17e   :  { %422 = vsyncpa [#allocation3], 1 }
 0x17f   :  { %424 = vsyncpa [#allocation3 + $0x1], 1 }
 0x180   :  { %425 = vsyncpa [#allocation6], 1 }
 0x181   :  { %427 = vsyncpa [#allocation6 + $0x1], 1 }
 0x182   :  { %428 = vsyncpa [#allocation4], 1 }
 0x183   :  { %430 = vsyncpa [#allocation4 + $0x1], 1 }

</bundles_post_ra>
